<compile_context>
chip_gen: v7x
topology: tpu7x:2x2x1
jax: 0.10.0
libtpu: 0.0.40
codegen_flags: <defaults>
</compile_context>

<pallas_src>
import functools

import jax
import jax.numpy as jnp
from jax.experimental import pallas as pl
from jax.experimental.pallas import tpu as pltpu


def vae_kernel(x_ref, eps_ref,
               w1_ref, b1_ref, w2_ref, b2_ref,
               wh_ref, bh_ref,
               wd1_ref, bd1_ref, wd2_ref, bd2_ref, wd3_ref, bd3_ref,
               recon_ref, head_ref, *, latent_dim):
    # Cast activations to bf16 in VMEM (free VPU op); matmuls accumulate f32.
    x = x_ref[...].astype(jnp.bfloat16)            # (TILE_B, input_dim)

    # Encoder: Linear -> ReLU -> Linear -> ReLU
    h = jnp.dot(x, w1_ref[...], preferred_element_type=jnp.float32) + b1_ref[...]
    h = jnp.maximum(h, 0.0).astype(jnp.bfloat16)
    h = jnp.dot(h, w2_ref[...], preferred_element_type=jnp.float32) + b2_ref[...]
    h = jnp.maximum(h, 0.0).astype(jnp.bfloat16)

    # Fused latent heads: one (hidden, 2*latent) matmul -> [mu | logvar] (f32)
    head = jnp.dot(h, wh_ref[...], preferred_element_type=jnp.float32) + bh_ref[...]
    mu = head[:, :latent_dim]
    logvar = head[:, latent_dim:]

    # Reparameterize in f32: z = mu + eps * exp(0.5 * logvar)
    std = jnp.exp(0.5 * logvar)
    z = (mu + eps_ref[...] * std).astype(jnp.bfloat16)

    # Decoder: Linear -> ReLU -> Linear -> ReLU -> Linear
    d = jnp.dot(z, wd1_ref[...], preferred_element_type=jnp.float32) + bd1_ref[...]
    d = jnp.maximum(d, 0.0).astype(jnp.bfloat16)
    d = jnp.dot(d, wd2_ref[...], preferred_element_type=jnp.float32) + bd2_ref[...]
    d = jnp.maximum(d, 0.0).astype(jnp.bfloat16)
    recon = jnp.dot(d, wd3_ref[...], preferred_element_type=jnp.float32) + bd3_ref[...]

    # Direct stores (no concatenate): recon in bf16 halves the largest HBM
    # stream; head stays f32 so mu/logvar keep full precision downstream.
    recon_ref[...] = recon.astype(recon_ref.dtype)
    head_ref[...] = head


def _pick_tile_b(batch, requested=None):
    """Pick a batch tile.

    Targets 512-2048 rows per grid step (amortizes the ~0.35 us per-step
    pipeline overhead), prefers >= 2 grid steps (so v7x's two TensorCores
    both get work via the "parallel" batch axis), and prefers a tile that
    divides the batch exactly so no padding / partial block is needed.
    """
    if requested is None:
        requested = 1024
    requested = max(8, requested)

    if batch <= 2 * requested:
        # Small batch: exactly 2 steps when cleanly splittable, else 1 block.
        half = batch // 2
        if batch >= 16 and batch % 2 == 0 and half % 8 == 0:
            return half
        return batch  # full-extent block: always legal, never padded

    tile = (min(requested, batch) // 8) * 8
    t = tile
    while t >= 512:
        if batch % t == 0:
            return t          # divides batch -> no trailing partial block
        t -= 8
    return tile               # fallback: Pallas masks the trailing partial block


def init_params(key, input_dim, latent_dim=16, hidden_dims=(32, 32)):
    """Synthetic params. W stored as (in, out) bf16; biases (1, out) f32.

    mu/logvar heads are pre-fused into a single (hidden, 2*latent) weight.
    """
    keys = jax.random.split(key, 16)
    ki = 0

    def lin(kw, kb, fan_in, fan_out):
        bound = 1.0 / jnp.sqrt(fan_in)
        w = jax.random.uniform(kw, (fan_in, fan_out), jnp.float32, -bound, bound)
        b = jax.random.uniform(kb, (1, fan_out), jnp.float32, -bound, bound)
        return w.astype(jnp.bfloat16), b

    params = {}
    dims_enc = [input_dim] + list(hidden_dims)
    enc = []
    for i in range(len(hidden_dims)):
        enc.append(lin(keys[ki], keys[ki + 1], dims_enc[i], dims_enc[i + 1]))
        ki += 2
    params["enc"] = enc

    wmu, bmu = lin(keys[ki], keys[ki + 1], hidden_dims[-1], latent_dim); ki += 2
    wlv, blv = lin(keys[ki], keys[ki + 1], hidden_dims[-1], latent_dim); ki += 2
    params["head"] = (jnp.concatenate([wmu, wlv], axis=-1),
                      jnp.concatenate([bmu, blv], axis=-1))

    dims_dec = [latent_dim] + list(reversed(hidden_dims)) + [input_dim]
    dec = []
    for i in range(len(dims_dec) - 1):
        dec.append(lin(keys[ki], keys[ki + 1], dims_dec[i], dims_dec[i + 1]))
        ki += 2
    params["dec"] = dec
    params["latent_dim"] = latent_dim
    return params


def tabular_vae_forward(x, eps, params, tile_b=None):
    batch, input_dim = x.shape
    latent_dim = params["latent_dim"]
    head_cols = 2 * latent_dim

    tile_b = _pick_tile_b(batch, tile_b)
    grid = (pl.cdiv(batch, tile_b),)   # trailing partial block (rare) is masked

    (w1, b1), (w2, b2) = params["enc"]
    wh, bh = params["head"]
    (wd1, bd1), (wd2, bd2), (wd3, bd3) = params["dec"]
    weights = (w1, b1, w2, b2, wh, bh, wd1, bd1, wd2, bd2, wd3, bd3)

    def act_spec(cols):
        return pl.BlockSpec((tile_b, cols), lambda i: (i, 0))

    def const_spec(arr):
        # Same block every grid step -> weight stays resident in VMEM.
        return pl.BlockSpec(tuple(arr.shape), lambda i: (0, 0))

    in_specs = ([act_spec(input_dim), act_spec(latent_dim)] +
                [const_spec(a) for a in weights])
    out_specs = [act_spec(input_dim), act_spec(head_cols)]
    out_shape = (jax.ShapeDtypeStruct((batch, input_dim), jnp.bfloat16),
                 jax.ShapeDtypeStruct((batch, head_cols), jnp.float32))

    # NOTE(v5e): the 32-lane outputs use masked stores; padding out_cols to
    # 128 or a (features, batch) layout would make them lane-dense, but only
    # if the consumer accepts that layout end-to-end.
    recon, head = pl.pallas_call(
        functools.partial(vae_kernel, latent_dim=latent_dim),
        out_shape=out_shape,
        grid=grid,
        in_specs=in_specs,
        out_specs=out_specs,
        compiler_params=pltpu.CompilerParams(
            dimension_semantics=("parallel",)),
    )(x, eps.astype(jnp.float32), *weights)

    mu = head[:, :latent_dim]
    logvar = head[:, latent_dim:]
    return recon, mu, logvar


def tabular_vae_reference(x, eps, params):
    """Pure-JAX reference mirroring the kernel numerics (bf16 weights, f32 eps)."""
    latent_dim = params["latent_dim"]
    h = x.astype(jnp.bfloat16)
    for w, b in params["enc"]:
        h = jnp.maximum(
            jnp.dot(h, w, preferred_element_type=jnp.float32) + b, 0.0
        ).astype(jnp.bfloat16)
    wh, bh = params["head"]
    head = jnp.dot(h, wh, preferred_element_type=jnp.float32) + bh
    mu = head[:, :latent_dim]
    logvar = head[:, latent_dim:]
    z = (mu + eps.astype(jnp.float32) * jnp.exp(0.5 * logvar)).astype(jnp.bfloat16)
    d = z
    for w, b in params["dec"][:-1]:
        d = jnp.maximum(
            jnp.dot(d, w, preferred_element_type=jnp.float32) + b, 0.0
        ).astype(jnp.bfloat16)
    wd, bd = params["dec"][-1]
    recon = jnp.dot(d, wd, preferred_element_type=jnp.float32) + bd
    return recon, mu, logvar


if __name__ == "__main__":
    batch = 256            # tile picker -> 2 grid steps of 128 rows
    input_dim = 32
    latent_dim = 16
    hidden_dims = (32, 32)

    key = jax.random.PRNGKey(0)
    kx, keps, kparams = jax.random.split(key, 3)

    x = jax.random.normal(kx, (batch, input_dim), jnp.float32)
    eps = jax.random.normal(keps, (batch, latent_dim), jnp.float32)
    params = init_params(kparams, input_dim, latent_dim, hidden_dims)

    recon, mu, logvar = jax.block_until_ready(
        tabular_vae_forward(x, eps, params))

    r_ref, mu_ref, lv_ref = tabular_vae_reference(x, eps, params)
    assert recon.shape == (batch, input_dim)
    assert mu.shape == (batch, latent_dim) and logvar.shape == (batch, latent_dim)
    assert jnp.allclose(recon.astype(jnp.float32), r_ref.astype(jnp.float32),
                        atol=3e-2, rtol=3e-2)
    assert jnp.allclose(mu, mu_ref, atol=1e-2, rtol=1e-2)
    assert jnp.allclose(logvar, lv_ref, atol=1e-2, rtol=1e-2)

    print("KERNEL_OK")
</pallas_src>

<mosaic_0001>
module attributes {stable_mosaic.version = 11 : i64} {
  func.func @vae_kernel(%arg0: i32, %arg1: memref<128x32xf32, #tpu.memory_space<vmem>>, %arg2: memref<128x16xf32, #tpu.memory_space<vmem>>, %arg3: memref<32x32xbf16, #tpu.memory_space<vmem>>, %arg4: memref<1x32xf32, #tpu.memory_space<vmem>>, %arg5: memref<32x32xbf16, #tpu.memory_space<vmem>>, %arg6: memref<1x32xf32, #tpu.memory_space<vmem>>, %arg7: memref<32x32xbf16, #tpu.memory_space<vmem>>, %arg8: memref<1x32xf32, #tpu.memory_space<vmem>>, %arg9: memref<16x32xbf16, #tpu.memory_space<vmem>>, %arg10: memref<1x32xf32, #tpu.memory_space<vmem>>, %arg11: memref<32x32xbf16, #tpu.memory_space<vmem>>, %arg12: memref<1x32xf32, #tpu.memory_space<vmem>>, %arg13: memref<32x32xbf16, #tpu.memory_space<vmem>>, %arg14: memref<1x32xf32, #tpu.memory_space<vmem>>, %arg15: memref<128x32xbf16, #tpu.memory_space<vmem>>, %arg16: memref<128x32xf32, #tpu.memory_space<vmem>>) attributes {dimension_semantics = [#tpu.dimension_semantics<parallel>], iteration_bounds = array<i64: 2>, scalar_prefetch = 0 : i64, scratch_operands = 0 : i64, tpu.core_type = #tpu.core_type<tc>, window_params = [{transform_indices = @transform_0, window_bounds = array<i64: 128, 32>}, {transform_indices = @transform_1, window_bounds = array<i64: 128, 16>}, {pipeline_mode = #tpu.pipeline_mode<synchronous>, transform_indices = @transform_2, window_bounds = array<i64: 32, 32>}, {pipeline_mode = #tpu.pipeline_mode<synchronous>, transform_indices = @transform_3, window_bounds = array<i64: 1, 32>}, {pipeline_mode = #tpu.pipeline_mode<synchronous>, transform_indices = @transform_4, window_bounds = array<i64: 32, 32>}, {pipeline_mode = #tpu.pipeline_mode<synchronous>, transform_indices = @transform_5, window_bounds = array<i64: 1, 32>}, {pipeline_mode = #tpu.pipeline_mode<synchronous>, transform_indices = @transform_6, window_bounds = array<i64: 32, 32>}, {pipeline_mode = #tpu.pipeline_mode<synchronous>, transform_indices = @transform_7, window_bounds = array<i64: 1, 32>}, {pipeline_mode = #tpu.pipeline_mode<synchronous>, transform_indices = @transform_8, window_bounds = array<i64: 16, 32>}, {pipeline_mode = #tpu.pipeline_mode<synchronous>, transform_indices = @transform_9, window_bounds = array<i64: 1, 32>}, {pipeline_mode = #tpu.pipeline_mode<synchronous>, transform_indices = @transform_10, window_bounds = array<i64: 32, 32>}, {pipeline_mode = #tpu.pipeline_mode<synchronous>, transform_indices = @transform_11, window_bounds = array<i64: 1, 32>}, {pipeline_mode = #tpu.pipeline_mode<synchronous>, transform_indices = @transform_12, window_bounds = array<i64: 32, 32>}, {pipeline_mode = #tpu.pipeline_mode<synchronous>, transform_indices = @transform_13, window_bounds = array<i64: 1, 32>}, {transform_indices = @transform_14, window_bounds = array<i64: 128, 32>}, {transform_indices = @transform_15, window_bounds = array<i64: 128, 32>}]} {
    %c0 = arith.constant 0 : index
    %c0_0 = arith.constant 0 : index
    %0 = vector.load %arg1[%c0, %c0_0] : memref<128x32xf32, #tpu.memory_space<vmem>>, vector<128x32xf32>
    %1 = arith.truncf %0 : vector<128x32xf32> to vector<128x32xbf16>
    %c0_1 = arith.constant 0 : index
    %c0_2 = arith.constant 0 : index
    %2 = vector.load %arg3[%c0_1, %c0_2] : memref<32x32xbf16, #tpu.memory_space<vmem>>, vector<32x32xbf16>
    %cst = arith.constant dense<0.000000e+00> : vector<128x32xf32>
    %3 = tpu.matmul %1, %2, %cst {dimension_numbers = #tpu.dot_dimension_numbers<[1], [0], [0], [1], [0, 0, 1, 1], [], []>} : vector<128x32xbf16>, vector<32x32xbf16>, vector<128x32xf32> -> vector<128x32xf32>
    %c0_3 = arith.constant 0 : index
    %c0_4 = arith.constant 0 : index
    %4 = vector.load %arg4[%c0_3, %c0_4] : memref<1x32xf32, #tpu.memory_space<vmem>>, vector<1x32xf32>
    %5 = vector.broadcast %4 : vector<1x32xf32> to vector<128x32xf32>
    %6 = arith.addf %3, %5 : vector<128x32xf32>
    %cst_5 = arith.constant 0.000000e+00 : f32
    %7 = vector.broadcast %cst_5 : f32 to vector<128x32xf32>
    %8 = arith.maximumf %6, %7 : vector<128x32xf32>
    %9 = arith.truncf %8 : vector<128x32xf32> to vector<128x32xbf16>
    %c0_6 = arith.constant 0 : index
    %c0_7 = arith.constant 0 : index
    %10 = vector.load %arg5[%c0_6, %c0_7] : memref<32x32xbf16, #tpu.memory_space<vmem>>, vector<32x32xbf16>
    %cst_8 = arith.constant dense<0.000000e+00> : vector<128x32xf32>
    %11 = tpu.matmul %9, %10, %cst_8 {dimension_numbers = #tpu.dot_dimension_numbers<[1], [0], [0], [1], [0, 0, 1, 1], [], []>} : vector<128x32xbf16>, vector<32x32xbf16>, vector<128x32xf32> -> vector<128x32xf32>
    %c0_9 = arith.constant 0 : index
    %c0_10 = arith.constant 0 : index
    %12 = vector.load %arg6[%c0_9, %c0_10] : memref<1x32xf32, #tpu.memory_space<vmem>>, vector<1x32xf32>
    %13 = vector.broadcast %12 : vector<1x32xf32> to vector<128x32xf32>
    %14 = arith.addf %11, %13 : vector<128x32xf32>
    %cst_11 = arith.constant 0.000000e+00 : f32
    %15 = vector.broadcast %cst_11 : f32 to vector<128x32xf32>
    %16 = arith.maximumf %14, %15 : vector<128x32xf32>
    %17 = arith.truncf %16 : vector<128x32xf32> to vector<128x32xbf16>
    %c0_12 = arith.constant 0 : index
    %c0_13 = arith.constant 0 : index
    %18 = vector.load %arg7[%c0_12, %c0_13] : memref<32x32xbf16, #tpu.memory_space<vmem>>, vector<32x32xbf16>
    %cst_14 = arith.constant dense<0.000000e+00> : vector<128x32xf32>
    %19 = tpu.matmul %17, %18, %cst_14 {dimension_numbers = #tpu.dot_dimension_numbers<[1], [0], [0], [1], [0, 0, 1, 1], [], []>} : vector<128x32xbf16>, vector<32x32xbf16>, vector<128x32xf32> -> vector<128x32xf32>
    %c0_15 = arith.constant 0 : index
    %c0_16 = arith.constant 0 : index
    %20 = vector.load %arg8[%c0_15, %c0_16] : memref<1x32xf32, #tpu.memory_space<vmem>>, vector<1x32xf32>
    %21 = vector.broadcast %20 : vector<1x32xf32> to vector<128x32xf32>
    %22 = arith.addf %19, %21 : vector<128x32xf32>
    %23 = vector.extract_strided_slice %22 {offsets = [0, 0], sizes = [128, 16], strides = [1, 1]} : vector<128x32xf32> to vector<128x16xf32>
    %24 = vector.extract_strided_slice %22 {offsets = [0, 16], sizes = [128, 16], strides = [1, 1]} : vector<128x32xf32> to vector<128x16xf32>
    %cst_17 = arith.constant 5.000000e-01 : f32
    %25 = vector.broadcast %cst_17 : f32 to vector<128x16xf32>
    %26 = arith.mulf %25, %24 : vector<128x16xf32>
    %27 = math.exp %26 : vector<128x16xf32>
    %c0_18 = arith.constant 0 : index
    %c0_19 = arith.constant 0 : index
    %28 = vector.load %arg2[%c0_18, %c0_19] : memref<128x16xf32, #tpu.memory_space<vmem>>, vector<128x16xf32>
    %29 = arith.mulf %28, %27 : vector<128x16xf32>
    %30 = arith.addf %23, %29 : vector<128x16xf32>
    %31 = arith.truncf %30 : vector<128x16xf32> to vector<128x16xbf16>
    %c0_20 = arith.constant 0 : index
    %c0_21 = arith.constant 0 : index
    %32 = vector.load %arg9[%c0_20, %c0_21] : memref<16x32xbf16, #tpu.memory_space<vmem>>, vector<16x32xbf16>
    %cst_22 = arith.constant dense<0.000000e+00> : vector<128x32xf32>
    %33 = tpu.matmul %31, %32, %cst_22 {dimension_numbers = #tpu.dot_dimension_numbers<[1], [0], [0], [1], [0, 0, 1, 1], [], []>} : vector<128x16xbf16>, vector<16x32xbf16>, vector<128x32xf32> -> vector<128x32xf32>
    %c0_23 = arith.constant 0 : index
    %c0_24 = arith.constant 0 : index
    %34 = vector.load %arg10[%c0_23, %c0_24] : memref<1x32xf32, #tpu.memory_space<vmem>>, vector<1x32xf32>
    %35 = vector.broadcast %34 : vector<1x32xf32> to vector<128x32xf32>
    %36 = arith.addf %33, %35 : vector<128x32xf32>
    %cst_25 = arith.constant 0.000000e+00 : f32
    %37 = vector.broadcast %cst_25 : f32 to vector<128x32xf32>
    %38 = arith.maximumf %36, %37 : vector<128x32xf32>
    %39 = arith.truncf %38 : vector<128x32xf32> to vector<128x32xbf16>
    %c0_26 = arith.constant 0 : index
    %c0_27 = arith.constant 0 : index
    %40 = vector.load %arg11[%c0_26, %c0_27] : memref<32x32xbf16, #tpu.memory_space<vmem>>, vector<32x32xbf16>
    %cst_28 = arith.constant dense<0.000000e+00> : vector<128x32xf32>
    %41 = tpu.matmul %39, %40, %cst_28 {dimension_numbers = #tpu.dot_dimension_numbers<[1], [0], [0], [1], [0, 0, 1, 1], [], []>} : vector<128x32xbf16>, vector<32x32xbf16>, vector<128x32xf32> -> vector<128x32xf32>
    %c0_29 = arith.constant 0 : index
    %c0_30 = arith.constant 0 : index
    %42 = vector.load %arg12[%c0_29, %c0_30] : memref<1x32xf32, #tpu.memory_space<vmem>>, vector<1x32xf32>
    %43 = vector.broadcast %42 : vector<1x32xf32> to vector<128x32xf32>
    %44 = arith.addf %41, %43 : vector<128x32xf32>
    %cst_31 = arith.constant 0.000000e+00 : f32
    %45 = vector.broadcast %cst_31 : f32 to vector<128x32xf32>
    %46 = arith.maximumf %44, %45 : vector<128x32xf32>
    %47 = arith.truncf %46 : vector<128x32xf32> to vector<128x32xbf16>
    %c0_32 = arith.constant 0 : index
    %c0_33 = arith.constant 0 : index
    %48 = vector.load %arg13[%c0_32, %c0_33] : memref<32x32xbf16, #tpu.memory_space<vmem>>, vector<32x32xbf16>
    %cst_34 = arith.constant dense<0.000000e+00> : vector<128x32xf32>
    %49 = tpu.matmul %47, %48, %cst_34 {dimension_numbers = #tpu.dot_dimension_numbers<[1], [0], [0], [1], [0, 0, 1, 1], [], []>} : vector<128x32xbf16>, vector<32x32xbf16>, vector<128x32xf32> -> vector<128x32xf32>
    %c0_35 = arith.constant 0 : index
    %c0_36 = arith.constant 0 : index
    %50 = vector.load %arg14[%c0_35, %c0_36] : memref<1x32xf32, #tpu.memory_space<vmem>>, vector<1x32xf32>
    %51 = vector.broadcast %50 : vector<1x32xf32> to vector<128x32xf32>
    %52 = arith.addf %49, %51 : vector<128x32xf32>
    %53 = arith.truncf %52 : vector<128x32xf32> to vector<128x32xbf16>
    %c0_37 = arith.constant 0 : index
    %c0_38 = arith.constant 0 : index
    %54 = vector.load %arg15[%c0_37, %c0_38] : memref<128x32xbf16, #tpu.memory_space<vmem>>, vector<128x32xbf16>
    tpu.vector_store %arg15[%c0_37, %c0_38], %53 {strides = array<i32>} : memref<128x32xbf16, #tpu.memory_space<vmem>>, vector<128x32xbf16>,
    %c0_39 = arith.constant 0 : index
    %c0_40 = arith.constant 0 : index
    %55 = vector.load %arg16[%c0_39, %c0_40] : memref<128x32xf32, #tpu.memory_space<vmem>>, vector<128x32xf32>
    tpu.vector_store %arg16[%c0_39, %c0_40], %22 {strides = array<i32>} : memref<128x32xf32, #tpu.memory_space<vmem>>, vector<128x32xf32>,
    return
  }
  func.func @transform_0(%arg0: i32) -> (i32, i32) {
    %c0_i32 = arith.constant 0 : i32
    %c0_i32_0 = arith.constant 0 : i32
    return %arg0, %c0_i32 : i32, i32
  }
  func.func @transform_1(%arg0: i32) -> (i32, i32) {
    %c0_i32 = arith.constant 0 : i32
    %c0_i32_0 = arith.constant 0 : i32
    return %arg0, %c0_i32 : i32, i32
  }
  func.func @transform_2(%arg0: i32) -> (i32, i32) {
    %c0_i32 = arith.constant 0 : i32
    %c0_i32_0 = arith.constant 0 : i32
    %c0_i32_1 = arith.constant 0 : i32
    return %c0_i32, %c0_i32_0 : i32, i32
  }
  func.func @transform_3(%arg0: i32) -> (i32, i32) {
    %c0_i32 = arith.constant 0 : i32
    %c0_i32_0 = arith.constant 0 : i32
    %c0_i32_1 = arith.constant 0 : i32
    return %c0_i32, %c0_i32_0 : i32, i32
  }
  func.func @transform_4(%arg0: i32) -> (i32, i32) {
    %c0_i32 = arith.constant 0 : i32
    %c0_i32_0 = arith.constant 0 : i32
    %c0_i32_1 = arith.constant 0 : i32
    return %c0_i32, %c0_i32_0 : i32, i32
  }
  func.func @transform_5(%arg0: i32) -> (i32, i32) {
    %c0_i32 = arith.constant 0 : i32
    %c0_i32_0 = arith.constant 0 : i32
    %c0_i32_1 = arith.constant 0 : i32
    return %c0_i32, %c0_i32_0 : i32, i32
  }
  func.func @transform_6(%arg0: i32) -> (i32, i32) {
    %c0_i32 = arith.constant 0 : i32
    %c0_i32_0 = arith.constant 0 : i32
    %c0_i32_1 = arith.constant 0 : i32
    return %c0_i32, %c0_i32_0 : i32, i32
  }
  func.func @transform_7(%arg0: i32) -> (i32, i32) {
    %c0_i32 = arith.constant 0 : i32
    %c0_i32_0 = arith.constant 0 : i32
    %c0_i32_1 = arith.constant 0 : i32
    return %c0_i32, %c0_i32_0 : i32, i32
  }
  func.func @transform_8(%arg0: i32) -> (i32, i32) {
    %c0_i32 = arith.constant 0 : i32
    %c0_i32_0 = arith.constant 0 : i32
    %c0_i32_1 = arith.constant 0 : i32
    return %c0_i32, %c0_i32_0 : i32, i32
  }
  func.func @transform_9(%arg0: i32) -> (i32, i32) {
    %c0_i32 = arith.constant 0 : i32
    %c0_i32_0 = arith.constant 0 : i32
    %c0_i32_1 = arith.constant 0 : i32
    return %c0_i32, %c0_i32_0 : i32, i32
  }
  func.func @transform_10(%arg0: i32) -> (i32, i32) {
    %c0_i32 = arith.constant 0 : i32
    %c0_i32_0 = arith.constant 0 : i32
    %c0_i32_1 = arith.constant 0 : i32
    return %c0_i32, %c0_i32_0 : i32, i32
  }
  func.func @transform_11(%arg0: i32) -> (i32, i32) {
    %c0_i32 = arith.constant 0 : i32
    %c0_i32_0 = arith.constant 0 : i32
    %c0_i32_1 = arith.constant 0 : i32
    return %c0_i32, %c0_i32_0 : i32, i32
  }
  func.func @transform_12(%arg0: i32) -> (i32, i32) {
    %c0_i32 = arith.constant 0 : i32
    %c0_i32_0 = arith.constant 0 : i32
    %c0_i32_1 = arith.constant 0 : i32
    return %c0_i32, %c0_i32_0 : i32, i32
  }
  func.func @transform_13(%arg0: i32) -> (i32, i32) {
    %c0_i32 = arith.constant 0 : i32
    %c0_i32_0 = arith.constant 0 : i32
    %c0_i32_1 = arith.constant 0 : i32
    return %c0_i32, %c0_i32_0 : i32, i32
  }
  func.func @transform_14(%arg0: i32) -> (i32, i32) {
    %c0_i32 = arith.constant 0 : i32
    %c0_i32_0 = arith.constant 0 : i32
    return %arg0, %c0_i32 : i32, i32
  }
  func.func @transform_15(%arg0: i32) -> (i32, i32) {
    %c0_i32 = arith.constant 0 : i32
    %c0_i32_0 = arith.constant 0 : i32
    return %arg0, %c0_i32 : i32, i32
  }
}

</mosaic_0001>

<bundles_post_ra>
// kernel: tpu_custom_call.1
= control target key start
LH: loop header
LB: loop body
LE: loop exit
PB: predicated region body
PF: predicated region fallthrough
CT: control target
= control target key end

     0   :  { %s2310_s18 = smov 0   ;;  %s2659_s0 = inlined_call_operand.vmem [shape: f32[256,32], index: 0, kind: input, shape index: {}]   ;;  %s2660_s1 = inlined_call_operand.vmem [shape: f32[256,16], index: 1, kind: input, shape index: {}]   ;;  %s2661_s2 = inlined_call_operand.vmem [shape: bf16[32,32], index: 2, kind: input, shape index: {}]   ;;  %s2662_s3 = inlined_call_operand.vmem [shape: f32[1,32], index: 3, kind: input, shape index: {}]   ;;  %s2663_s4 = inlined_call_operand.vmem [shape: bf16[32,32], index: 4, kind: input, shape index: {}]   ;;  %s2664_s5 = inlined_call_operand.vmem [shape: f32[1,32], index: 5, kind: input, shape index: {}]   ;;  %s2665_s6 = inlined_call_operand.vmem [shape: bf16[32,32], index: 6, kind: input, shape index: {}]   ;;  %s2666_s7 = inlined_call_operand.vmem [shape: f32[1,32], index: 7, kind: input, shape index: {}]   ;;  %s2667_s8 = inlined_call_operand.vmem [shape: bf16[16,32], index: 8, kind: input, shape index: {}]   ;;  %s2668_s9 = inlined_call_operand.vmem [shape: f32[1,32], index: 9, kind: input, shape index: {}]   ;;  %s2669_s10 = inlined_call_operand.vmem [shape: bf16[32,32], index: 10, kind: input, shape index: {}]   ;;  %s2670_s11 = inlined_call_operand.vmem [shape: f32[1,32], index: 11, kind: input, shape index: {}]   ;;  %s2671_s12 = inlined_call_operand.vmem [shape: bf16[32,32], index: 12, kind: input, shape index: {}]   ;;  %s2672_s13 = inlined_call_operand.vmem [shape: f32[1,32], index: 13, kind: input, shape index: {}]   ;;  %s2673_s14 = inlined_call_operand.vmem [shape: bf16[256,32], index: 14, kind: output, shape index: {0}]   ;;  %s2674_s15 = inlined_call_operand.vmem [shape: f32[256,32], index: 15, kind: output, shape index: {1}]  }
   0x1 LB: > { %s1880_s19 = sadd.s32 4294967295, %s2227_s18   ;;  %p1884_p0 = scmp.ge.s32.totalorder %s2227_s18, 1  ;;  %s2227_s18 = sphi %s2310_s18, %s26_s18  }
   0x2   : > { %p452_p1 = scmp.lt.s32.totalorder %s2227_s18, 3 }
   0x4   : > { %p453_p2 = pnand %p1884_p0, %p452_p1 }
   0x5   : > { %v2178_v0 = vld [vmem:[%s2661_s2] sm:$0xff] (!%p453_p2)   ;;  %s1885_s22 = sshll.u32 (!%p453_p2), %s1880_s19, 4  ;;  %v2179_v1 = vld [vmem:[%s2661_s2 + $0x8] sm:$0xff] (!%p453_p2)   ;;  %vm582_vm0 = vcmask (!%p453_p2), 261120   ;;  %s2229_s23 = smov (!%p453_p2), 112   ;;  %vm1223_vm1 = vcmask (!%p453_p2), 130048  }
   0x6   : > { %456 = sbr.rel (%p453_p2) target bundleno = 1509 (0x5e5), region = 76  ;;  %p511_p3 = scmp.lt.s32.totalorder (!%p453_p2), %s1885_s22, 31  ;;  %2051 = vmatprep.subr.bf16.mxu0 (!%p453_p2), %v2178_v0  ;;  %v2180_v26 = vld [vmem:[%s2663_s4] sm:$0xff] (!%p453_p2)   ;;  %v2181_v27 = vld [vmem:[%s2663_s4 + $0x8] sm:$0xff] (!%p453_p2)   ;;  %vm1745_vm2 = vcmask (!%p453_p2), 257024  }
   0x7   : > { %2052 = vmatpush3.bf16.msra.mxu0 (!%p453_p2), %v2178_v0  ;;  %2071 = vmatprep.subr.bf16.mxu1 (!%p453_p2), %v2180_v26  ;;  %v2182_v28 = vld [vmem:[%s2665_s6] sm:$0xff] (!%p453_p2)   ;;  %v2183_v29 = vld [vmem:[%s2665_s6 + $0x8] sm:$0xff] (!%p453_p2)  }
   0x8   : > { %2053 = vmatprep.subr.bf16.mxu0 (!%p453_p2), %v2179_v1  ;;  %2072 = vmatpush3.bf16.msra.mxu1 (!%p453_p2), %v2180_v26  ;;  %v1893_v30 = vld [vmem:[%s2662_s3] ss:$0 sm:$0xff] (!%p453_p2) }
   0x9   : > { %2073 = vmatprep.subr.bf16.mxu1 (!%p453_p2), %v2181_v27 }
   0xb   : > { %2054 = vmatpush3.bf16.msra.mxu0 (!%p453_p2), %v2179_v1 }
   0xc   : > { %2074 = vmatpush3.bf16.msra.mxu1 (!%p453_p2), %v2181_v27  ;;  %2091 = vmatprep.subr.bf16.mxu0 (!%p453_p2), %v2182_v28 }
   0xd   : > { %s2676_s22 = smov (!%p511_p3, %s1885_s22), 31 }
   0xe   : > { %s2327_s25 = sshll.u32 %s2676_s22, 3  ;;  %s1890_s29 = sshll.u32 %s2676_s22, 2 }
   0xf   : > { %s2333_s28 = scalar_lea.vmem %s2659_s0, %s2327_s25  ;;  %s2405_s21 = scalar_lea.vmem %s2674_s15, %s2327_s25 }
  0x10   : > { %v535_v2 = vld [vmem:[%s2333_s28] sm:$0xff]  ;;  %v536_v3 = vld [vmem:[%s2333_s28 + $0x8] sm:$0xff]  ;;  %v537_v4 = vld [vmem:[%s2333_s28 + $0x10] sm:$0xff]  ;;  %s2545_s16 = scalar_lea.vmem %s2660_s1, %s2327_s25  ;;  %s2622_s25 = scalar_lea.vmem %s2673_s14, %s1890_s29 }
  0x11   : > { %v551_v5 = vpack.c.bf16 %v536_v3, %v535_v2  ;;  %v538_v6 = vld [vmem:[%s2333_s28 + $0x18] sm:$0xff]  ;;  %v539_v7 = vld [vmem:[%s2333_s28 + $0x20] sm:$0xff]  ;;  %v540_v8 = vld [vmem:[%s2333_s28 + $0x28] sm:$0xff] }
  0x12   : > { %v552_v9 = vpack.c.bf16 %v538_v6, %v537_v4  ;;  %v553_v10 = vpack.c.bf16 %v540_v8, %v539_v7  ;;  %v541_v11 = vld [vmem:[%s2333_s28 + $0x30] sm:$0xff]  ;;  %v542_v12 = vld [vmem:[%s2333_s28 + $0x38] sm:$0xff]  ;;  %v543_v13 = vld [vmem:[%s2333_s28 + $0x40] sm:$0xff] }
  0x13   : > { %2055 = vmatprep.mubr.msk.bf16.mxu0 %vm582_vm0, %v551_v5  ;;  %v544_v14 = vld [vmem:[%s2333_s28 + $0x48] sm:$0xff]  ;;  %v554_v15 = vpack.c.bf16 %v542_v12, %v541_v11  ;;  %v545_v17 = vld [vmem:[%s2333_s28 + $0x50] sm:$0xff]  ;;  %v546_v18 = vld [vmem:[%s2333_s28 + $0x58] sm:$0xff] }
  0x14   : > { %2056 = vmatmul.mubr.msk.bf16.vlgmr.msra.gmra.mrb[0].mxu0 %vm582_vm0, %v552_v9  ;;  %v555_v16 = vpack.c.bf16 %v544_v14, %v543_v13  ;;  %v547_v19 = vld [vmem:[%s2333_s28 + $0x60] sm:$0xff]  ;;  %v548_v20 = vld [vmem:[%s2333_s28 + $0x68] sm:$0xff]  ;;  %v556_v21 = vpack.c.bf16 %v546_v18, %v545_v17  ;;  %v549_v23 = vld [vmem:[%s2333_s28 + $0x70] sm:$0xff] }
  0x15   : > { %2059 = vmatprep.mubr.msk.bf16.mxu0 %vm582_vm0, %v553_v10  ;;  %v557_v22 = vpack.c.bf16 %v548_v20, %v547_v19  ;;  %v550_v24 = vld [vmem:[%s2333_s28 + $0x78] sm:$0xff]  ;;  %2092 = vmatpush3.bf16.msra.mxu0 %v2182_v28 }
  0x16   : > { %v558_v25 = vpack.c.bf16 %v550_v24, %v549_v23  ;;  %2093 = vmatprep.subr.bf16.mxu0 %v2183_v29  ;;  %v1904_v23 = vld [vmem:[%s2664_s5] ss:$0 sm:$0xff] }
  0x19   : > { %2094 = vmatpush3.bf16.msra.mxu0 %v2183_v29 }
  0x1c   : > { %2060 = vmatmul.mubr.msk.bf16.gmra.mrb[4].mxu0 %vm582_vm0, %v554_v15 }
  0x1d   : > { %2063 = vmatprep.mubr.msk.bf16.mxu0 %vm582_vm0, %v555_v16 }
  0x24   : > { %2064 = vmatmul.mubr.msk.bf16.gmra.mrb[8].mxu0 %vm582_vm0, %v556_v21 }
  0x25   : > { %2067 = vmatprep.mubr.msk.bf16.mxu0 %vm582_vm0, %v557_v22 }
  0x2c   : > { %2068 = vmatmul.mubr.msk.bf16.gmra.mrb[12].mxu0 %vm582_vm0, %v558_v25 }
  0xe7   : > { %v2057_v31 = vpop.f32.mrb[0].mxu0 }
  0xe8   : > { %v650_v32 = vadd.f32 %v2057_v31, %v1893_v30  ;;  %v641_v33 = vpop.f32.mrb[1].mxu0 }
  0xe9   : > { %v642_v34 = vadd.f32 %v1893_v30, %v641_v33  ;;  %v2058_v35 = vpop.f32.mrb[2].mxu0 }
  0xea   : > { %v653_v36 = vadd.f32 %v2058_v35, %v1893_v30  ;;  %v644_v37 = vpop.f32.mrb[3].mxu0  ;;  %v706_v39 = vmax.f32 %v650_v32, 0.0 }
  0xeb   : > { %v645_v38 = vadd.f32 %v1893_v30, %v644_v37  ;;  %v704_v41 = vmax.f32 %v642_v34, 0.0 }
  0xec   : > { %v707_v40 = vmax.f32 %v653_v36, 0.0 }
  0xed   : > { %v705_v42 = vmax.f32 %v645_v38, 0.0 }
  0xee   : > { %v721_v43 = vpack.c.bf16 %v707_v40, %v706_v39 }
  0xef   : > { %v2061_v44 = vpop.f32.mrb[4].mxu0  ;;  %v720_v45 = vpack.c.bf16 %v705_v42, %v704_v41 }
  0xf0   : > { %v666_v46 = vadd.f32 %v2061_v44, %v1893_v30  ;;  %v657_v47 = vpop.f32.mrb[5].mxu0 }
  0xf1   : > { %v658_v48 = vadd.f32 %v1893_v30, %v657_v47  ;;  %v2062_v49 = vpop.f32.mrb[6].mxu0  ;;  %2075 = vmatprep.mubr.msk.bf16.mxu1 %vm582_vm0, %v720_v45 }
  0xf2   : > { %v669_v50 = vadd.f32 %v2062_v49, %v1893_v30  ;;  %v660_v51 = vpop.f32.mrb[7].mxu0  ;;  %2076 = vmatmul.mubr.msk.bf16.vlgmr.msra.gmra.mrb[0].mxu1 %vm582_vm0, %v721_v43  ;;  %v710_v53 = vmax.f32 %v666_v46, 0.0 }
  0xf3   : > { %v661_v52 = vadd.f32 %v1893_v30, %v660_v51  ;;  %v708_v55 = vmax.f32 %v658_v48, 0.0 }
  0xf4   : > { %v711_v54 = vmax.f32 %v669_v50, 0.0 }
  0xf5   : > { %v709_v56 = vmax.f32 %v661_v52, 0.0 }
  0xf6   : > { %v723_v57 = vpack.c.bf16 %v711_v54, %v710_v53 }
  0xf7   : > { %v722_v58 = vpack.c.bf16 %v709_v56, %v708_v55  ;;  %v2065_v59 = vpop.f32.mrb[8].mxu0 }
  0xf8   : > { %v682_v60 = vadd.f32 %v2065_v59, %v1893_v30  ;;  %v673_v61 = vpop.f32.mrb[9].mxu0 }
  0xf9   : > { %v674_v62 = vadd.f32 %v1893_v30, %v673_v61  ;;  %v2066_v63 = vpop.f32.mrb[10].mxu0  ;;  %2079 = vmatprep.mubr.msk.bf16.mxu1 %vm582_vm0, %v722_v58 }
  0xfa   : > { %v685_v0 = vadd.f32 %v2066_v63, %v1893_v30  ;;  %v676_v1 = vpop.f32.mrb[11].mxu0  ;;  %2080 = vmatmul.mubr.msk.bf16.gmra.mrb[4].mxu1 %vm582_vm0, %v723_v57  ;;  %v714_v3 = vmax.f32 %v682_v60, 0.0 }
  0xfb   : > { %v677_v2 = vadd.f32 %v1893_v30, %v676_v1  ;;  %v712_v5 = vmax.f32 %v674_v62, 0.0 }
  0xfc   : > { %v715_v4 = vmax.f32 %v685_v0, 0.0 }
  0xfd   : > { %v713_v6 = vmax.f32 %v677_v2, 0.0 }
  0xfe   : > { %v725_v7 = vpack.c.bf16 %v715_v4, %v714_v3 }
  0xff   : > { %v724_v8 = vpack.c.bf16 %v713_v6, %v712_v5  ;;  %v2069_v9 = vpop.f32.mrb[12].mxu0 }
 0x100   : > { %v698_v10 = vadd.f32 %v2069_v9, %v1893_v30  ;;  %v689_v11 = vpop.f32.mrb[13].mxu0 }
 0x101   : > { %v690_v12 = vadd.f32 %v1893_v30, %v689_v11  ;;  %v2070_v13 = vpop.f32.mrb[14].mxu0  ;;  %2083 = vmatprep.mubr.msk.bf16.mxu1 %vm582_vm0, %v724_v8 }
 0x102   : > { %v701_v14 = vadd.f32 %v2070_v13, %v1893_v30  ;;  %v692_v15 = vpop.f32.mrb[15].mxu0  ;;  %2084 = vmatmul.mubr.msk.bf16.gmra.mrb[8].mxu1 %vm582_vm0, %v725_v7  ;;  %v718_v17 = vmax.f32 %v698_v10, 0.0 }
 0x103   : > { %v693_v16 = vadd.f32 %v1893_v30, %v692_v15  ;;  %v716_v19 = vmax.f32 %v690_v12, 0.0 }
 0x104   : > { %v719_v18 = vmax.f32 %v701_v14, 0.0 }
 0x105   : > { %v717_v20 = vmax.f32 %v693_v16, 0.0  ;;  %v2184_v16 = vld [vmem:[%s2667_s8] sm:$0xff]  }
 0x106   : > { %v727_v21 = vpack.c.bf16 %v719_v18, %v718_v17  ;;  %2111 = vmatprep.subr.bf16.mxu1 %v2184_v16  ;;  %v2399_v17 = vld [vmem:[%s2666_s7] ss:$0 sm:$0xff] }
 0x107   : > { %v726_v22 = vpack.c.bf16 %v717_v20, %v716_v19  ;;  %2112 = vmatpush3.bf16.msra.mxu1 %v2184_v16 }
 0x109   : > { %2087 = vmatprep.mubr.msk.bf16.mxu1 %vm582_vm0, %v726_v22 }
 0x10a   : > { %2088 = vmatmul.mubr.msk.bf16.gmra.mrb[12].mxu1 %vm582_vm0, %v727_v21 }
 0x1c5   : > { %v2077_v24 = vpop.f32.mrb[0].mxu1 }
 0x1c6   : > { %v818_v25 = vadd.f32 %v2077_v24, %v1904_v23  ;;  %v809_v26 = vpop.f32.mrb[1].mxu1 }
 0x1c7   : > { %v810_v27 = vadd.f32 %v1904_v23, %v809_v26  ;;  %v2078_v28 = vpop.f32.mrb[2].mxu1 }
 0x1c8   : > { %v821_v29 = vadd.f32 %v2078_v28, %v1904_v23  ;;  %v812_v30 = vpop.f32.mrb[3].mxu1  ;;  %v874_v32 = vmax.f32 %v818_v25, 0.0 }
 0x1c9   : > { %v813_v31 = vadd.f32 %v1904_v23, %v812_v30  ;;  %v872_v34 = vmax.f32 %v810_v27, 0.0 }
 0x1ca   : > { %v875_v33 = vmax.f32 %v821_v29, 0.0 }
 0x1cb   : > { %v873_v35 = vmax.f32 %v813_v31, 0.0 }
 0x1cc   : > { %v889_v36 = vpack.c.bf16 %v875_v33, %v874_v32 }
 0x1cd   : > { %v888_v37 = vpack.c.bf16 %v873_v35, %v872_v34  ;;  %v2081_v38 = vpop.f32.mrb[4].mxu1 }
 0x1ce   : > { %v834_v39 = vadd.f32 %v2081_v38, %v1904_v23  ;;  %v825_v40 = vpop.f32.mrb[5].mxu1 }
 0x1cf   : > { %v826_v41 = vadd.f32 %v1904_v23, %v825_v40  ;;  %v2082_v42 = vpop.f32.mrb[6].mxu1  ;;  %2095 = vmatprep.mubr.msk.bf16.mxu0 %vm582_vm0, %v888_v37 }
 0x1d0   : > { %v837_v43 = vadd.f32 %v2082_v42, %v1904_v23  ;;  %v828_v44 = vpop.f32.mrb[7].mxu1  ;;  %2096 = vmatmul.mubr.msk.bf16.vlgmr.msra.gmra.mrb[16].mxu0 %vm582_vm0, %v889_v36  ;;  %v878_v46 = vmax.f32 %v834_v39, 0.0 }
 0x1d1   : > { %v829_v45 = vadd.f32 %v1904_v23, %v828_v44  ;;  %v876_v48 = vmax.f32 %v826_v41, 0.0 }
 0x1d2   : > { %v879_v47 = vmax.f32 %v837_v43, 0.0 }
 0x1d3   : > { %v877_v49 = vmax.f32 %v829_v45, 0.0 }
 0x1d4   : > { %v891_v50 = vpack.c.bf16 %v879_v47, %v878_v46 }
 0x1d5   : > { %v890_v51 = vpack.c.bf16 %v877_v49, %v876_v48  ;;  %v2085_v52 = vpop.f32.mrb[8].mxu1 }
 0x1d6   : > { %v850_v53 = vadd.f32 %v2085_v52, %v1904_v23  ;;  %v841_v54 = vpop.f32.mrb[9].mxu1 }
 0x1d7   : > { %v842_v55 = vadd.f32 %v1904_v23, %v841_v54  ;;  %v2086_v56 = vpop.f32.mrb[10].mxu1  ;;  %2099 = vmatprep.mubr.msk.bf16.mxu0 %vm582_vm0, %v890_v51 }
 0x1d8   : > { %v853_v57 = vadd.f32 %v2086_v56, %v1904_v23  ;;  %v844_v58 = vpop.f32.mrb[11].mxu1  ;;  %2100 = vmatmul.mubr.msk.bf16.gmra.mrb[20].mxu0 %vm582_vm0, %v891_v50  ;;  %v882_v60 = vmax.f32 %v850_v53, 0.0 }
 0x1d9   : > { %v845_v59 = vadd.f32 %v1904_v23, %v844_v58  ;;  %v880_v62 = vmax.f32 %v842_v55, 0.0 }
 0x1da   : > { %v883_v61 = vmax.f32 %v853_v57, 0.0 }
 0x1db   : > { %v881_v63 = vmax.f32 %v845_v59, 0.0 }
 0x1dc   : > { %v893_v0 = vpack.c.bf16 %v883_v61, %v882_v60 }
 0x1dd   : > { %v892_v1 = vpack.c.bf16 %v881_v63, %v880_v62  ;;  %v2089_v2 = vpop.f32.mrb[12].mxu1 }
 0x1de   : > { %v866_v3 = vadd.f32 %v2089_v2, %v1904_v23  ;;  %v857_v4 = vpop.f32.mrb[13].mxu1 }
 0x1df   : > { %v858_v5 = vadd.f32 %v1904_v23, %v857_v4  ;;  %v2090_v6 = vpop.f32.mrb[14].mxu1  ;;  %2103 = vmatprep.mubr.msk.bf16.mxu0 %vm582_vm0, %v892_v1 }
 0x1e0   : > { %v869_v7 = vadd.f32 %v2090_v6, %v1904_v23  ;;  %v860_v8 = vpop.f32.mrb[15].mxu1  ;;  %2104 = vmatmul.mubr.msk.bf16.gmra.mrb[24].mxu0 %vm582_vm0, %v893_v0  ;;  %v886_v10 = vmax.f32 %v866_v3, 0.0 }
 0x1e1   : > { %v861_v9 = vadd.f32 %v1904_v23, %v860_v8  ;;  %v884_v12 = vmax.f32 %v858_v5, 0.0 }
 0x1e2   : > { %v887_v11 = vmax.f32 %v869_v7, 0.0 }
 0x1e3   : > { %v885_v13 = vmax.f32 %v861_v9, 0.0 }
 0x1e4   : > { %v895_v14 = vpack.c.bf16 %v887_v11, %v886_v10 }
 0x1e5   : > { %v894_v15 = vpack.c.bf16 %v885_v13, %v884_v12 }
 0x1e7   : > { %2107 = vmatprep.mubr.msk.bf16.mxu0 %vm582_vm0, %v894_v15 }
 0x1e8   : > { %2108 = vmatmul.mubr.msk.bf16.gmra.mrb[28].mxu0 %vm582_vm0, %v895_v14 }
 0x2a3   : > { %v2097_v18 = vpop.f32.mrb[16].mxu0 }
 0x2a4   : > { %v2408_v19 = vadd.f32 %v2097_v18, %v2399_v17  ;;  %v977_v20 = vpop.f32.mrb[17].mxu0 }
 0x2a5   : > { %v2411_v21 = vadd.f32 %v2399_v17, %v977_v20  ;;  %v2098_v22 = vpop.f32.mrb[18].mxu0 }
 0x2a6   : > { %v1042_v23 = vmul.f32 0.5, %v2408_v19  ;;  %1764 = vst.msk [vmem:[%s2405_s21 + $0x10] sm:$0xff] %vm582_vm0, %v2408_v19  ;;  %v2418_v24 = vadd.f32 %v2098_v22, %v2399_v17  ;;  %v980_v25 = vpop.f32.mrb[19].mxu0 }
 0x2a7   : > { %v1040_v26 = vmul.f32 0.5, %v2411_v21  ;;  %1762 = vst.msk [vmem:[%s2405_s21] sm:$0xff] %vm582_vm0, %v2411_v21  ;;  %v2425_v27 = vadd.f32 %v2399_v17, %v980_v25 }
 0x2a8   : > { %v1060_v28 = vmul.f32 1.442695, %v1042_v23  ;;  %v1043_v29 = vmul.f32 0.5, %v2418_v24  ;;  %1765 = vst.msk [vmem:[%s2405_s21 + $0x18] sm:$0xff] %vm582_vm0, %v2418_v24 }
 0x2a9   : > { %v1056_v30 = vmul.f32 1.442695, %v1040_v26  ;;  %v1041_v31 = vmul.f32 0.5, %v2425_v27  ;;  %1763 = vst.msk [vmem:[%s2405_s21 + $0x8] sm:$0xff] %vm582_vm0, %v2425_v27 }
 0x2aa   : > { %2189 = vpow2.f32 %v1060_v28  ;;  %v1062_v32 = vmul.f32 1.442695, %v1043_v29 }
 0x2ab   : > { %2191 = vpow2.f32 %v1056_v30  ;;  %v1058_v33 = vmul.f32 1.442695, %v1041_v31  ;;  %v2101_v34 = vpop.f32.mrb[20].mxu0 }
 0x2ac   : > { %v2436_v35 = vadd.f32 %v2101_v34, %v2399_v17  ;;  %v993_v36 = vpop.f32.mrb[21].mxu0  ;;  %2193 = vpow2.f32 %v1062_v32 }
 0x2ad   : > { %v2439_v37 = vadd.f32 %v2399_v17, %v993_v36  ;;  %v2102_v38 = vpop.f32.mrb[22].mxu0  ;;  %2195 = vpow2.f32 %v1058_v33  ;;  %v2185_v36 = vld [vmem:[%s2669_s10] sm:$0xff]  }
 0x2ae   : > { %1768 = vst.msk [vmem:[%s2405_s21 + $0x30] sm:$0xff] %vm582_vm0, %v2436_v35  ;;  %v2445_v39 = vadd.f32 %v2102_v38, %v2399_v17  ;;  %v996_v40 = vpop.f32.mrb[23].mxu0  ;;  %v1046_v41 = vmul.f32 0.5, %v2436_v35  ;;  %v2186_v38 = vld [vmem:[%s2669_s10 + $0x8] sm:$0xff]   ;;  %2129 = vmatprep.subr.bf16.mxu0 %v2185_v36 }
 0x2af   : > { %v1044_v42 = vmul.f32 0.5, %v2439_v37  ;;  %1766 = vst.msk [vmem:[%s2405_s21 + $0x20] sm:$0xff] %vm582_vm0, %v2439_v37  ;;  %v2453_v43 = vadd.f32 %v2399_v17, %v996_v40  ;;  %2130 = vmatpush3.bf16.msra.mxu0 %v2185_v36 }
 0x2b0   : > { %1769 = vst.msk [vmem:[%s2405_s21 + $0x38] sm:$0xff] %vm582_vm0, %v2445_v39  ;;  %v1047_v45 = vmul.f32 0.5, %v2445_v39  ;;  %v1068_v47 = vmul.f32 1.442695, %v1046_v41  ;;  %2131 = vmatprep.subr.bf16.mxu0 %v2186_v38 }
 0x2b1   : > { %v1064_v44 = vmul.f32 1.442695, %v1044_v42  ;;  %v1045_v46 = vmul.f32 0.5, %v2453_v43  ;;  %1767 = vst.msk [vmem:[%s2405_s21 + $0x28] sm:$0xff] %vm582_vm0, %v2453_v43 }
 0x2b2   : > { %v1070_v54 = vmul.f32 1.442695, %v1047_v45  ;;  %v1088_v45 = vld [vmem:[%s2545_s16] sm:$0xff] }
 0x2b3   : > { %2197 = vpow2.f32 %v1064_v44  ;;  %v1066_v48 = vmul.f32 1.442695, %v1045_v46  ;;  %v2105_v49 = vpop.f32.mrb[24].mxu0  ;;  %2132 = vmatpush3.bf16.msra.mxu0 %v2186_v38 }
 0x2b4   : > { %v2190_v50 = vpop.eup %2189  ;;  %v2464_v51 = vadd.f32 %v2105_v49, %v2399_v17  ;;  %v1009_v52 = vpop.f32.mrb[25].mxu0  ;;  %v1089_v49 = vld [vmem:[%s2545_s16 + $0x8] sm:$0xff] }
 0x2b5   : > { %v2192_v53 = vpop.eup %2191  ;;  %2199 = vpow2.f32 %v1066_v48  ;;  %v2467_v55 = vadd.f32 %v2399_v17, %v1009_v52  ;;  %1124 = vrot.lane.b32.xlu1 %v2190_v50, %s2229_s23  ;;  %v2106_v56 = vpop.f32.mrb[26].mxu0  ;;  %v1091_v48 = vld [vmem:[%s2545_s16 + $0x18] sm:$0xff] }
 0x2b6   : > { %1772 = vst.msk [vmem:[%s2405_s21 + $0x50] sm:$0xff] %vm582_vm0, %v2464_v51  ;;  %v2474_v57 = vadd.f32 %v2106_v56, %v2399_v17  ;;  %v1012_v58 = vpop.f32.mrb[27].mxu0  ;;  %1120 = vrot.lane.b32.xlu0 %v2192_v53, %s2229_s23  ;;  %2201 = vpow2.f32 %v1068_v47  ;;  %v1050_v59 = vmul.f32 0.5, %v2464_v51  ;;  %v2194_v62 = vpop.eup %2193  ;;  %v1090_v47 = vld [vmem:[%s2545_s16 + $0x10] sm:$0xff] }
 0x2b7   : > { %v1048_v60 = vmul.f32 0.5, %v2467_v55  ;;  %1770 = vst.msk [vmem:[%s2405_s21 + $0x40] sm:$0xff] %vm582_vm0, %v2467_v55  ;;  %v2483_v61 = vadd.f32 %v2399_v17, %v1012_v58  ;;  %v2196_v63 = vpop.eup %2195  ;;  %2203 = vpow2.f32 %v1070_v54 }
 0x2b8   : > { %1773 = vst.msk [vmem:[%s2405_s21 + $0x58] sm:$0xff] %vm582_vm0, %v2474_v57  ;;  %v1051_v1 = vmul.f32 0.5, %v2474_v57  ;;  %v1076_v3 = vmul.f32 1.442695, %v1050_v59 }
 0x2b9   : > { %v1072_v0 = vmul.f32 1.442695, %v1048_v60  ;;  %v1049_v2 = vmul.f32 0.5, %v2483_v61  ;;  %1771 = vst.msk [vmem:[%s2405_s21 + $0x48] sm:$0xff] %vm582_vm0, %v2483_v61  ;;  %1126 = vrot.lane.b32.xlu1 %v2194_v62, %s2229_s23  ;;  %v1092_v60 = vld [vmem:[%s2545_s16 + $0x20] sm:$0xff] }
 0x2ba   : > { %1122 = vrot.lane.b32.xlu0 %v2196_v63, %s2229_s23  ;;  %v1078_v9 = vmul.f32 1.442695, %v1051_v1 }
 0x2bb   : > { %2205 = vpow2.f32 %v1072_v0  ;;  %v1074_v4 = vmul.f32 1.442695, %v1049_v2  ;;  %v2109_v5 = vpop.f32.mrb[28].mxu0  ;;  %v1093_v2 = vld [vmem:[%s2545_s16 + $0x28] sm:$0xff] }
 0x2bc   : > { %v2496_v6 = vadd.f32 %v2109_v5, %v2399_v17  ;;  %v1025_v7 = vpop.f32.mrb[29].mxu0 }
 0x2bd   : > { %v2198_v8 = vpop.eup %2197  ;;  %2207 = vpow2.f32 %v1074_v4  ;;  %v2499_v10 = vadd.f32 %v2399_v17, %v1025_v7  ;;  %v2110_v11 = vpop.f32.mrb[30].mxu0 }
 0x2be   : > { %1776 = vst.msk [vmem:[%s2405_s21 + $0x70] sm:$0xff] %vm582_vm0, %v2496_v6  ;;  %v2505_v12 = vadd.f32 %v2110_v11, %v2399_v17  ;;  %v1028_v13 = vpop.f32.mrb[31].mxu0  ;;  %1128 = vrot.lane.b32.xlu0 %v2198_v8, %s2229_s23  ;;  %2209 = vpow2.f32 %v1076_v3  ;;  %v1054_v15 = vmul.f32 0.5, %v2496_v6  ;;  %v1094_v8 = vld [vmem:[%s2545_s16 + $0x30] sm:$0xff] }
 0x2bf   : > { %v2200_v14 = vpop.eup %2199  ;;  %v1052_v16 = vmul.f32 0.5, %v2499_v10  ;;  %1774 = vst.msk [vmem:[%s2405_s21 + $0x60] sm:$0xff] %vm582_vm0, %v2499_v10  ;;  %v2514_v18 = vadd.f32 %v2399_v17, %v1028_v13  ;;  %2211 = vpow2.f32 %v1078_v9 }
 0x2c0   : > { %1777 = vst.msk [vmem:[%s2405_s21 + $0x78] sm:$0xff] %vm582_vm0, %v2505_v12  ;;  %1130 = vrot.lane.b32.xlu1 %v2200_v14, %s2229_s23  ;;  %v2202_v20 = vpop.eup %2201  ;;  %v1055_v23 = vmul.f32 0.5, %v2505_v12  ;;  %v1084_v17 = vmul.f32 1.442695, %v1054_v15  ;;  %v1096_v14 = vld [vmem:[%s2545_s16 + $0x40] sm:$0xff] }
 0x2c1   : > { %v1080_v22 = vmul.f32 1.442695, %v1052_v16  ;;  %v1053_v25 = vmul.f32 0.5, %v2514_v18  ;;  %1775 = vst.msk [vmem:[%s2405_s21 + $0x68] sm:$0xff] %vm582_vm0, %v2514_v18  ;;  %v2204_v26 = vpop.eup %2203 }
 0x2c2   : > { %1132 = vrot.lane.b32.xlu0 %v2202_v20, %s2229_s23  ;;  %v1086_v30 = vmul.f32 1.442695, %v1055_v23 }
 0x2c3   : > { %2213 = vpow2.f32 %v1080_v22  ;;  %v1082_v28 = vmul.f32 1.442695, %v1053_v25  ;;  %v1097_v22 = vld [vmem:[%s2545_s16 + $0x48] sm:$0xff] }
 0x2c4   : > { %1134 = vrot.lane.b32.xlu1 %v2204_v26, %s2229_s23 }
 0x2c5   : > { %v2206_v29 = vpop.eup %2205  ;;  %2215 = vpow2.f32 %v1082_v28 }
 0x2c6   : > { %1136 = vrot.lane.b32.xlu0 %v2206_v29, %s2229_s23  ;;  %2217 = vpow2.f32 %v1084_v17  ;;  %v1098_v17 = vld [vmem:[%s2545_s16 + $0x50] sm:$0xff] }
 0x2c7   : > { %v2208_v31 = vpop.eup %2207  ;;  %2219 = vpow2.f32 %v1086_v30  ;;  %v1099_v30 = vld [vmem:[%s2545_s16 + $0x58] sm:$0xff] }
 0x2c8   : > { %1138 = vrot.lane.b32.xlu1 %v2208_v31, %s2229_s23  ;;  %v2210_v32 = vpop.eup %2209 }
 0x2c9   : > { %v2212_v33 = vpop.eup %2211 }
 0x2ca   : > { %1140 = vrot.lane.b32.xlu0 %v2210_v32, %s2229_s23 }
 0x2cc   : > { %1142 = vrot.lane.b32.xlu1 %v2212_v33, %s2229_s23 }
 0x2cd   : > { %v2214_v34 = vpop.eup %2213 }
 0x2ce   : > { %1144 = vrot.lane.b32.xlu0 %v2214_v34, %s2229_s23 }
 0x2cf   : > { %v2216_v40 = vpop.eup %2215 }
 0x2d0   : > { %1146 = vrot.lane.b32.xlu1 %v2216_v40, %s2229_s23  ;;  %v2218_v41 = vpop.eup %2217  ;;  %v1101_v40 = vld [vmem:[%s2545_s16 + $0x68] sm:$0xff] }
 0x2d1   : > { %v2220_v42 = vpop.eup %2219 }
 0x2d2   : > { %1148 = vrot.lane.b32.xlu0 %v2218_v41, %s2229_s23 }
 0x2d4   : > { %1150 = vrot.lane.b32.xlu1 %v2220_v42, %s2229_s23 }
 0x327   : > { %v1125_v44 = vpop.permute.xlu1 %1124 }
 0x328   : > { %v1121_v46 = vpop.permute.xlu0 %1120  ;;  %v1170_v53 = vmul.f32 %v1125_v44, %v1090_v47 }
 0x329   : > { %v1168_v50 = vmul.f32 %v1121_v46, %v1088_v45  ;;  %v1102_v45 = vld [vmem:[%s2545_s16 + $0x70] sm:$0xff] }
 0x32a   : > { %v1186_v0 = vadd.f32 %v1170_v53, %v2408_v19 }
 0x32b   : > { %v1127_v52 = vpop.permute.xlu1 %1126  ;;  %v1184_v62 = vadd.f32 %v1168_v50, %v2411_v21 }
 0x32c   : > { %v1171_v54 = vmul.f32 %v1127_v52, %v1091_v48  ;;  %v1123_v56 = vpop.permute.xlu0 %1122  ;;  %v1103_v48 = vld [vmem:[%s2545_s16 + $0x78] sm:$0xff] }
 0x32d   : > { %v1169_v58 = vmul.f32 %v1123_v56, %v1089_v49 }
 0x32e   : > { %v1187_v59 = vadd.f32 %v1171_v54, %v2418_v24  ;;  %v1095_v24 = vld [vmem:[%s2545_s16 + $0x38] sm:$0xff] }
 0x32f   : > { %v1185_v63 = vadd.f32 %v1169_v58, %v2425_v27 }
 0x330   : > { %v1129_v1 = vpop.permute.xlu0 %1128  ;;  %v1201_v5 = vpack.c.bf16 %v1187_v59, %v1186_v0 }
 0x331   : > { %v1200_v3 = vpack.c.bf16 %v1185_v63, %v1184_v62  ;;  %v1172_v4 = vmul.f32 %v1129_v1, %v1092_v60 }
 0x332   : > { %v1131_v7 = vpop.permute.xlu1 %1130 }
 0x333   : > { %v1173_v9 = vmul.f32 %v1131_v7, %v1093_v2  ;;  %2113 = vmatprep.mubr.msk.bf16.mxu1 %vm1223_vm1, %v1200_v3  ;;  %v1188_v19 = vadd.f32 %v1172_v4, %v2439_v37 }
 0x334   : > { %2114 = vmatmul.mubr.msk.bf16.vlgmr.msra.gmra.mrb[16].mxu1 %vm1223_vm1, %v1201_v5  ;;  %v1133_v21 = vpop.permute.xlu0 %1132 }
 0x335   : > { %v1189_v27 = vadd.f32 %v1173_v9, %v2453_v43  ;;  %v1174_v11 = vmul.f32 %v1133_v21, %v1094_v8 }
 0x336   : > { %v1135_v13 = vpop.permute.xlu1 %1134 }
 0x337   : > { %v1202_v15 = vpack.c.bf16 %v1189_v27, %v1188_v19  ;;  %v1175_v16 = vmul.f32 %v1135_v13, %v1095_v24  ;;  %v1190_v23 = vadd.f32 %v1174_v11, %v2436_v35 }
 0x338   : > { %v1137_v20 = vpop.permute.xlu0 %1136 }
 0x339   : > { %v1191_v25 = vadd.f32 %v1175_v16, %v2445_v39  ;;  %v1176_v26 = vmul.f32 %v1137_v20, %v1096_v14  ;;  %2117 = vmatprep.mubr.msk.bf16.mxu1 %vm1223_vm1, %v1202_v15  ;;  %v1100_v39 = vld [vmem:[%s2545_s16 + $0x60] sm:$0xff] }
 0x33a   : > { %v1139_v37 = vpop.permute.xlu1 %1138 }
 0x33b   : > { %v1203_v43 = vpack.c.bf16 %v1191_v25, %v1190_v23  ;;  %v1177_v28 = vmul.f32 %v1139_v37, %v1097_v22  ;;  %v1192_v31 = vadd.f32 %v1176_v26, %v2467_v55 }
 0x33c   : > { %v1141_v29 = vpop.permute.xlu0 %1140 }
 0x33d   : > { %v1193_v32 = vadd.f32 %v1177_v28, %v2483_v61  ;;  %v1178_v33 = vmul.f32 %v1141_v29, %v1098_v17  ;;  %2118 = vmatmul.mubr.msk.bf16.gmra.mrb[20].mxu1 %vm1223_vm1, %v1203_v43 }
 0x33e   : > { %v1143_v35 = vpop.permute.xlu1 %1142 }
 0x33f   : > { %v1204_v34 = vpack.c.bf16 %v1193_v32, %v1192_v31  ;;  %v1179_v36 = vmul.f32 %v1143_v35, %v1099_v30  ;;  %v1194_v41 = vadd.f32 %v1178_v33, %v2464_v51 }
 0x340   : > { %v1145_v38 = vpop.permute.xlu0 %1144 }
 0x341   : > { %v1195_v42 = vadd.f32 %v1179_v36, %v2474_v57  ;;  %v1180_v44 = vmul.f32 %v1145_v38, %v1100_v39  ;;  %2121 = vmatprep.mubr.msk.bf16.mxu1 %vm1223_vm1, %v1204_v34 }
 0x342   : > { %v1147_v55 = vpop.permute.xlu1 %1146 }
 0x343   : > { %v1205_v61 = vpack.c.bf16 %v1195_v42, %v1194_v41  ;;  %v1181_v46 = vmul.f32 %v1147_v55, %v1101_v40  ;;  %v1196_v49 = vadd.f32 %v1180_v44, %v2499_v10  ;;  %v2187_v10 = vld [vmem:[%s2671_s12] sm:$0xff]  }
 0x344   : > { %v1149_v47 = vpop.permute.xlu0 %1148  ;;  %2149 = vmatprep.subr.bf16.mxu1 %v2187_v10 }
 0x345   : > { %v1197_v50 = vadd.f32 %v1181_v46, %v2514_v18  ;;  %v1182_v52 = vmul.f32 %v1149_v47, %v1102_v45  ;;  %2122 = vmatmul.mubr.msk.bf16.gmra.mrb[24].mxu1 %vm1223_vm1, %v1205_v61  ;;  %v2188_v18 = vld [vmem:[%s2671_s12 + $0x8] sm:$0xff]  }
 0x346   : > { %v1151_v53 = vpop.permute.xlu1 %1150  ;;  %2150 = vmatpush3.bf16.msra.mxu1 %v2187_v10 }
 0x347   : > { %v1206_v51 = vpack.c.bf16 %v1197_v50, %v1196_v49  ;;  %v1183_v54 = vmul.f32 %v1151_v53, %v1103_v48  ;;  %v1198_v57 = vadd.f32 %v1182_v52, %v2496_v6  ;;  %2151 = vmatprep.subr.bf16.mxu1 %v2188_v18  ;;  %v1926_v6 = vld [vmem:[%s2668_s9] ss:$0 sm:$0xff] }
 0x349   : > { %v1199_v56 = vadd.f32 %v1183_v54, %v2505_v12  ;;  %2125 = vmatprep.mubr.msk.bf16.mxu1 %vm1223_vm1, %v1206_v51  ;;  %v1936_v51 = vld [vmem:[%s2670_s11] ss:$0 sm:$0xff] }
 0x34a   : > { %2152 = vmatpush3.bf16.msra.mxu1 %v2188_v18 }
 0x34b   : > { %v1207_v58 = vpack.c.bf16 %v1199_v56, %v1198_v57 }
 0x34d   : > { %2126 = vmatmul.mubr.msk.bf16.gmra.mrb[28].mxu1 %vm1223_vm1, %v1207_v58 }
 0x407   : > { %v2115_v12 = vpop.f32.mrb[16].mxu1 }
 0x408   : > { %v1291_v59 = vadd.f32 %v2115_v12, %v1926_v6  ;;  %v1282_v60 = vpop.f32.mrb[17].mxu1 }
 0x409   : > { %v1283_v62 = vadd.f32 %v1926_v6, %v1282_v60  ;;  %v2116_v63 = vpop.f32.mrb[18].mxu1 }
 0x40a   : > { %v1294_v0 = vadd.f32 %v2116_v63, %v1926_v6  ;;  %v1285_v1 = vpop.f32.mrb[19].mxu1  ;;  %v1347_v3 = vmax.f32 %v1291_v59, 0.0 }
 0x40b   : > { %v1286_v2 = vadd.f32 %v1926_v6, %v1285_v1  ;;  %v1345_v5 = vmax.f32 %v1283_v62, 0.0 }
 0x40c   : > { %v1348_v4 = vmax.f32 %v1294_v0, 0.0 }
 0x40d   : > { %v1346_v7 = vmax.f32 %v1286_v2, 0.0 }
 0x40e   : > { %v1362_v8 = vpack.c.bf16 %v1348_v4, %v1347_v3 }
 0x40f   : > { %v1361_v9 = vpack.c.bf16 %v1346_v7, %v1345_v5 }
 0x410   : > { %v2119_v21 = vpop.f32.mrb[20].mxu1 }
 0x411   : > { %v1307_v24 = vadd.f32 %v2119_v21, %v1926_v6  ;;  %v1298_v19 = vpop.f32.mrb[21].mxu1  ;;  %2133 = vmatprep.mubr.msk.bf16.mxu0 %vm582_vm0, %v1361_v9 }
 0x412   : > { %v1299_v27 = vadd.f32 %v1926_v6, %v1298_v19  ;;  %v2120_v11 = vpop.f32.mrb[22].mxu1  ;;  %2134 = vmatmul.mubr.msk.bf16.vlgmr.msra.gmra.mrb[32].mxu0 %vm582_vm0, %v1362_v8 }
 0x413   : > { %v1310_v13 = vadd.f32 %v2120_v11, %v1926_v6  ;;  %v1301_v14 = vpop.f32.mrb[23].mxu1  ;;  %v1351_v16 = vmax.f32 %v1307_v24, 0.0 }
 0x414   : > { %v1302_v15 = vadd.f32 %v1926_v6, %v1301_v14  ;;  %v1349_v22 = vmax.f32 %v1299_v27, 0.0 }
 0x415   : > { %v1352_v20 = vmax.f32 %v1310_v13, 0.0 }
 0x416   : > { %v1350_v23 = vmax.f32 %v1302_v15, 0.0 }
 0x417   : > { %v1364_v25 = vpack.c.bf16 %v1352_v20, %v1351_v16 }
 0x418   : > { %v1363_v26 = vpack.c.bf16 %v1350_v23, %v1349_v22  ;;  %v2123_v37 = vpop.f32.mrb[24].mxu1 }
 0x419   : > { %v1323_v17 = vadd.f32 %v2123_v37, %v1926_v6  ;;  %v1314_v43 = vpop.f32.mrb[25].mxu1 }
 0x41a   : > { %v1315_v28 = vadd.f32 %v1926_v6, %v1314_v43  ;;  %v2124_v29 = vpop.f32.mrb[26].mxu1  ;;  %2137 = vmatprep.mubr.msk.bf16.mxu0 %vm582_vm0, %v1363_v26 }
 0x41b   : > { %v1326_v30 = vadd.f32 %v2124_v29, %v1926_v6  ;;  %v1317_v31 = vpop.f32.mrb[27].mxu1  ;;  %2138 = vmatmul.mubr.msk.bf16.gmra.mrb[36].mxu0 %vm582_vm0, %v1364_v25  ;;  %v1355_v33 = vmax.f32 %v1323_v17, 0.0 }
 0x41c   : > { %v1318_v32 = vadd.f32 %v1926_v6, %v1317_v31  ;;  %v1353_v39 = vmax.f32 %v1315_v28, 0.0 }
 0x41d   : > { %v1356_v35 = vmax.f32 %v1326_v30, 0.0 }
 0x41e   : > { %v1354_v34 = vmax.f32 %v1318_v32, 0.0 }
 0x41f   : > { %v1366_v36 = vpack.c.bf16 %v1356_v35, %v1355_v33 }
 0x420   : > { %v1365_v38 = vpack.c.bf16 %v1354_v34, %v1353_v39  ;;  %v2127_v40 = vpop.f32.mrb[28].mxu1 }
 0x421   : > { %v1339_v41 = vadd.f32 %v2127_v40, %v1926_v6  ;;  %v1330_v42 = vpop.f32.mrb[29].mxu1 }
 0x422   : > { %v1331_v44 = vadd.f32 %v1926_v6, %v1330_v42  ;;  %v2128_v55 = vpop.f32.mrb[30].mxu1  ;;  %2141 = vmatprep.mubr.msk.bf16.mxu0 %vm582_vm0, %v1365_v38 }
 0x423   : > { %v1342_v45 = vadd.f32 %v2128_v55, %v1926_v6  ;;  %v1333_v61 = vpop.f32.mrb[31].mxu1  ;;  %2142 = vmatmul.mubr.msk.bf16.gmra.mrb[40].mxu0 %vm582_vm0, %v1366_v36  ;;  %v1359_v47 = vmax.f32 %v1339_v41, 0.0 }
 0x424   : > { %v1334_v46 = vadd.f32 %v1926_v6, %v1333_v61  ;;  %v1357_v49 = vmax.f32 %v1331_v44, 0.0 }
 0x425   : > { %v1360_v48 = vmax.f32 %v1342_v45, 0.0 }
 0x426   : > { %v1358_v50 = vmax.f32 %v1334_v46, 0.0  ;;  %v1947_v46 = vld [vmem:[%s2672_s13] ss:$0 sm:$0xff] }
 0x427   : > { %v1368_v52 = vpack.c.bf16 %v1360_v48, %v1359_v47 }
 0x428   : > { %v1367_v53 = vpack.c.bf16 %v1358_v50, %v1357_v49 }
 0x42a   : > { %2145 = vmatprep.mubr.msk.bf16.mxu0 %vm582_vm0, %v1367_v53 }
 0x42b   : > { %2146 = vmatmul.mubr.msk.bf16.gmra.mrb[44].mxu0 %vm582_vm0, %v1368_v52 }
 0x4e5   : > { %v2135_v54 = vpop.f32.mrb[32].mxu0 }
 0x4e6   : > { %v1459_v57 = vadd.f32 %v2135_v54, %v1936_v51  ;;  %v1450_v56 = vpop.f32.mrb[33].mxu0 }
 0x4e7   : > { %v1451_v58 = vadd.f32 %v1936_v51, %v1450_v56  ;;  %v2136_v10 = vpop.f32.mrb[34].mxu0 }
 0x4e8   : > { %v1462_v18 = vadd.f32 %v2136_v10, %v1936_v51  ;;  %v1453_v6 = vpop.f32.mrb[35].mxu0  ;;  %v1515_v59 = vmax.f32 %v1459_v57, 0.0 }
 0x4e9   : > { %v1454_v12 = vadd.f32 %v1936_v51, %v1453_v6  ;;  %v1513_v62 = vmax.f32 %v1451_v58, 0.0 }
 0x4ea   : > { %v1516_v60 = vmax.f32 %v1462_v18, 0.0 }
 0x4eb   : > { %v1514_v63 = vmax.f32 %v1454_v12, 0.0 }
 0x4ec   : > { %v1530_v0 = vpack.c.bf16 %v1516_v60, %v1515_v59 }
 0x4ed   : > { %v1529_v1 = vpack.c.bf16 %v1514_v63, %v1513_v62 }
 0x4ee   : > { %v2139_v2 = vpop.f32.mrb[36].mxu0 }
 0x4ef   : > { %v1475_v3 = vadd.f32 %v2139_v2, %v1936_v51  ;;  %v1466_v4 = vpop.f32.mrb[37].mxu0  ;;  %2153 = vmatprep.mubr.msk.bf16.mxu1 %vm582_vm0, %v1529_v1 }
 0x4f0   : > { %v1467_v5 = vadd.f32 %v1936_v51, %v1466_v4  ;;  %v2140_v7 = vpop.f32.mrb[38].mxu0  ;;  %2154 = vmatmul.mubr.msk.bf16.vlgmr.msra.gmra.mrb[32].mxu1 %vm582_vm0, %v1530_v0 }
 0x4f1   : > { %v1478_v8 = vadd.f32 %v2140_v7, %v1936_v51  ;;  %v1469_v9 = vpop.f32.mrb[39].mxu0  ;;  %v1519_v24 = vmax.f32 %v1475_v3, 0.0 }
 0x4f2   : > { %v1470_v21 = vadd.f32 %v1936_v51, %v1469_v9  ;;  %v1517_v27 = vmax.f32 %v1467_v5, 0.0 }
 0x4f3   : > { %v1520_v19 = vmax.f32 %v1478_v8, 0.0 }
 0x4f4   : > { %v1518_v11 = vmax.f32 %v1470_v21, 0.0 }
 0x4f5   : > { %v1532_v13 = vpack.c.bf16 %v1520_v19, %v1519_v24 }
 0x4f6   : > { %v1531_v14 = vpack.c.bf16 %v1518_v11, %v1517_v27  ;;  %v2143_v15 = vpop.f32.mrb[40].mxu0 }
 0x4f7   : > { %v1491_v16 = vadd.f32 %v2143_v15, %v1936_v51  ;;  %v1482_v20 = vpop.f32.mrb[41].mxu0 }
 0x4f8   : > { %v1483_v22 = vadd.f32 %v1936_v51, %v1482_v20  ;;  %v2144_v23 = vpop.f32.mrb[42].mxu0  ;;  %2157 = vmatprep.mubr.msk.bf16.mxu1 %vm582_vm0, %v1531_v14 }
 0x4f9   : > { %v1494_v25 = vadd.f32 %v2144_v23, %v1936_v51  ;;  %v1485_v26 = vpop.f32.mrb[43].mxu0  ;;  %2158 = vmatmul.mubr.msk.bf16.gmra.mrb[36].mxu1 %vm582_vm0, %v1532_v13  ;;  %v1523_v17 = vmax.f32 %v1491_v16, 0.0 }
 0x4fa   : > { %v1486_v37 = vadd.f32 %v1936_v51, %v1485_v26  ;;  %v1521_v28 = vmax.f32 %v1483_v22, 0.0 }
 0x4fb   : > { %v1524_v43 = vmax.f32 %v1494_v25, 0.0 }
 0x4fc   : > { %v1522_v29 = vmax.f32 %v1486_v37, 0.0 }
 0x4fd   : > { %v1534_v30 = vpack.c.bf16 %v1524_v43, %v1523_v17 }
 0x4fe   : > { %v1533_v31 = vpack.c.bf16 %v1522_v29, %v1521_v28  ;;  %v2147_v32 = vpop.f32.mrb[44].mxu0 }
 0x4ff   : > { %v1507_v33 = vadd.f32 %v2147_v32, %v1936_v51  ;;  %v1498_v35 = vpop.f32.mrb[45].mxu0 }
 0x500   : > { %v1499_v39 = vadd.f32 %v1936_v51, %v1498_v35  ;;  %v2148_v34 = vpop.f32.mrb[46].mxu0  ;;  %2161 = vmatprep.mubr.msk.bf16.mxu1 %vm582_vm0, %v1533_v31 }
 0x501   : > { %v1510_v36 = vadd.f32 %v2148_v34, %v1936_v51  ;;  %v1501_v38 = vpop.f32.mrb[47].mxu0  ;;  %2162 = vmatmul.mubr.msk.bf16.gmra.mrb[40].mxu1 %vm582_vm0, %v1534_v30  ;;  %v1527_v41 = vmax.f32 %v1507_v33, 0.0 }
 0x502   : > { %v1502_v40 = vadd.f32 %v1936_v51, %v1501_v38  ;;  %v1525_v44 = vmax.f32 %v1499_v39, 0.0 }
 0x503   : > { %v1528_v42 = vmax.f32 %v1510_v36, 0.0 }
 0x504   : > { %v1526_v55 = vmax.f32 %v1502_v40, 0.0 }
 0x505   : > { %v1536_v45 = vpack.c.bf16 %v1528_v42, %v1527_v41 }
 0x506   : > { %v1535_v61 = vpack.c.bf16 %v1526_v55, %v1525_v44 }
 0x508   : > { %2165 = vmatprep.mubr.msk.bf16.mxu1 %vm582_vm0, %v1535_v61 }
 0x509   : > { %2166 = vmatmul.mubr.msk.bf16.gmra.mrb[44].mxu1 %vm582_vm0, %v1536_v45 }
 0x5c3   : > { %v2155_v47 = vpop.f32.mrb[32].mxu1 }
 0x5c4   : > { %v1627_v48 = vadd.f32 %v2155_v47, %v1947_v46  ;;  %v1618_v49 = vpop.f32.mrb[33].mxu1 }
 0x5c5   : > { %v1619_v50 = vadd.f32 %v1947_v46, %v1618_v49  ;;  %v2156_v52 = vpop.f32.mrb[34].mxu1 }
 0x5c6   : > { %v1978_v53 = vpack.c.bf16 %v1627_v48, %v1627_v48  ;;  %v1630_v51 = vadd.f32 %v2156_v52, %v1947_v46  ;;  %v1621_v54 = vpop.f32.mrb[35].mxu1 }
 0x5c7   : > { %v1976_v57 = vpack.c.bf16 %v1619_v50, %v1619_v50  ;;  %v1622_v56 = vadd.f32 %v1947_v46, %v1621_v54 }
 0x5c8   : > { %1748 = vst.msk [vmem:[%s2622_s25 + $0x8] sm:$0xf] %vm1745_vm2, %v1978_v53  ;;  %v1979_v58 = vpack.c.bf16 %v1630_v51, %v1630_v51 }
 0x5c9   : > { %1746 = vst.msk [vmem:[%s2622_s25] sm:$0xf] %vm1745_vm2, %v1976_v57  ;;  %v1977_v10 = vpack.c.bf16 %v1622_v56, %v1622_v56 }
 0x5ca   : > { %1749 = vst.msk [vmem:[%s2622_s25 + $0xc] sm:$0xf] %vm1745_vm2, %v1979_v58 }
 0x5cb   : > { %1747 = vst.msk [vmem:[%s2622_s25 + $0x4] sm:$0xf] %vm1745_vm2, %v1977_v10 }
 0x5cc   : > { %v2159_v18 = vpop.f32.mrb[36].mxu1 }
 0x5cd   : > { %v1643_v6 = vadd.f32 %v2159_v18, %v1947_v46  ;;  %v1634_v12 = vpop.f32.mrb[37].mxu1 }
 0x5ce   : > { %v1635_v59 = vadd.f32 %v1947_v46, %v1634_v12  ;;  %v2160_v60 = vpop.f32.mrb[38].mxu1 }
 0x5cf   : > { %v1982_v62 = vpack.c.bf16 %v1643_v6, %v1643_v6  ;;  %v1646_v63 = vadd.f32 %v2160_v60, %v1947_v46  ;;  %v1637_v0 = vpop.f32.mrb[39].mxu1 }
 0x5d0   : > { %v1980_v1 = vpack.c.bf16 %v1635_v59, %v1635_v59  ;;  %v1638_v2 = vadd.f32 %v1947_v46, %v1637_v0 }
 0x5d1   : > { %1752 = vst.msk [vmem:[%s2622_s25 + $0x18] sm:$0xf] %vm1745_vm2, %v1982_v62  ;;  %v1983_v3 = vpack.c.bf16 %v1646_v63, %v1646_v63 }
 0x5d2   : > { %1750 = vst.msk [vmem:[%s2622_s25 + $0x10] sm:$0xf] %vm1745_vm2, %v1980_v1  ;;  %v1981_v4 = vpack.c.bf16 %v1638_v2, %v1638_v2 }
 0x5d3   : > { %1753 = vst.msk [vmem:[%s2622_s25 + $0x1c] sm:$0xf] %vm1745_vm2, %v1983_v3 }
 0x5d4   : > { %1751 = vst.msk [vmem:[%s2622_s25 + $0x14] sm:$0xf] %vm1745_vm2, %v1981_v4  ;;  %v2163_v5 = vpop.f32.mrb[40].mxu1 }
 0x5d5   : > { %v1659_v7 = vadd.f32 %v2163_v5, %v1947_v46  ;;  %v1650_v8 = vpop.f32.mrb[41].mxu1 }
 0x5d6   : > { %v1651_v9 = vadd.f32 %v1947_v46, %v1650_v8  ;;  %v2164_v21 = vpop.f32.mrb[42].mxu1 }
 0x5d7   : > { %v1986_v24 = vpack.c.bf16 %v1659_v7, %v1659_v7  ;;  %v1662_v19 = vadd.f32 %v2164_v21, %v1947_v46  ;;  %v1653_v27 = vpop.f32.mrb[43].mxu1 }
 0x5d8   : > { %v1984_v11 = vpack.c.bf16 %v1651_v9, %v1651_v9  ;;  %v1654_v13 = vadd.f32 %v1947_v46, %v1653_v27 }
 0x5d9   : > { %1756 = vst.msk [vmem:[%s2622_s25 + $0x28] sm:$0xf] %vm1745_vm2, %v1986_v24  ;;  %v1987_v14 = vpack.c.bf16 %v1662_v19, %v1662_v19 }
 0x5da   : > { %1754 = vst.msk [vmem:[%s2622_s25 + $0x20] sm:$0xf] %vm1745_vm2, %v1984_v11  ;;  %v1985_v15 = vpack.c.bf16 %v1654_v13, %v1654_v13 }
 0x5db   : > { %1757 = vst.msk [vmem:[%s2622_s25 + $0x2c] sm:$0xf] %vm1745_vm2, %v1987_v14 }
 0x5dc   : > { %1755 = vst.msk [vmem:[%s2622_s25 + $0x24] sm:$0xf] %vm1745_vm2, %v1985_v15  ;;  %v2167_v16 = vpop.f32.mrb[44].mxu1 }
 0x5dd   : > { %v1675_v20 = vadd.f32 %v2167_v16, %v1947_v46  ;;  %v1666_v22 = vpop.f32.mrb[45].mxu1 }
 0x5de   : > { %v1667_v23 = vadd.f32 %v1947_v46, %v1666_v22  ;;  %v2168_v25 = vpop.f32.mrb[46].mxu1 }
 0x5df   : > { %v1990_v26 = vpack.c.bf16 %v1675_v20, %v1675_v20  ;;  %v1678_v37 = vadd.f32 %v2168_v25, %v1947_v46  ;;  %v1669_v17 = vpop.f32.mrb[47].mxu1 }
 0x5e0   : > { %v1988_v43 = vpack.c.bf16 %v1667_v23, %v1667_v23  ;;  %v1670_v28 = vadd.f32 %v1947_v46, %v1669_v17 }
 0x5e1   : > { %1760 = vst.msk [vmem:[%s2622_s25 + $0x38] sm:$0xf] %vm1745_vm2, %v1990_v26  ;;  %v1991_v29 = vpack.c.bf16 %v1678_v37, %v1678_v37 }
 0x5e2   : > { %1758 = vst.msk [vmem:[%s2622_s25 + $0x30] sm:$0xf] %vm1745_vm2, %v1988_v43  ;;  %v1989_v30 = vpack.c.bf16 %v1670_v28, %v1670_v28 }
 0x5e3   : > { %1761 = vst.msk [vmem:[%s2622_s25 + $0x3c] sm:$0xf] %vm1745_vm2, %v1991_v29 }
 0x5e4   : > { %1759 = vst.msk [vmem:[%s2622_s25 + $0x34] sm:$0xf] %vm1745_vm2, %v1989_v30 }
 0x5e5 PF: > { %s26_s18 = sadd.s32 1, %s2227_s18  }
 0x5e6   : > { %p23_p4 = scmp.ge.s32.totalorder %s26_s18, 4  }
 0x5e8   :  { %25 = sbr.rel (!%p23_p4) target bundleno = 1 (0x1), region = 121 }

</bundles_post_ra>
